<compile_context>
chip_gen: v7x
topology: tpu7x:2x2x1
jax: 0.10.0
libtpu: 0.0.40
codegen_flags: <defaults>
</compile_context>

<pallas_src>
import math
import functools

import jax
import jax.numpy as jnp
from jax import lax
from jax.experimental import pallas as pl
from jax.experimental.pallas import tpu as pltpu


# ---------------------------------------------------------------------------
# Linear kernel: out = x @ W + b, gridded over rows (M = B*T).
# ---------------------------------------------------------------------------
def _linear_bias_kernel(x_ref, w_ref, b_ref, o_ref):
    x = x_ref[...].astype(jnp.bfloat16)            # MXU-native operand dtype
    acc = jnp.dot(x, w_ref[...], preferred_element_type=jnp.float32)
    o_ref[...] = (acc + b_ref[...]).astype(o_ref.dtype)


def _linear_pallas(x2d, w_bf16, b_row):
    """x2d: (M, K) f32, w_bf16: (K, N) bf16, b_row: (1, N) f32 -> (M, N) f32."""
    M, K = x2d.shape
    N = w_bf16.shape[1]
    if M % 256 == 0:
        tm = 256
    elif M % 128 == 0:
        tm = 128
    else:
        tm = M                                     # small / ragged: one block
    grid = (pl.cdiv(M, tm),)
    return pl.pallas_call(
        _linear_bias_kernel,
        out_shape=jax.ShapeDtypeStruct((M, N), jnp.float32),
        grid_spec=pltpu.PrefetchScalarGridSpec(
            num_scalar_prefetch=0,
            grid=grid,
            in_specs=[
                pl.BlockSpec((tm, K), lambda i: (i, 0)),
                pl.BlockSpec((K, N), lambda i: (0, 0)),
                pl.BlockSpec((1, N), lambda i: (0, 0)),
            ],
            out_specs=pl.BlockSpec((tm, N), lambda i: (i, 0)),
        ),
        compiler_params=pltpu.CompilerParams(
            dimension_semantics=("parallel",)),
    )(x2d, w_bf16, b_row)


# ---------------------------------------------------------------------------
# Flash-style causal attention kernel (heads batched in one dot_general).
# grid = (B, num_q_tiles, num_kv_tiles); kv axis is the online-softmax
# reduction axis ("arbitrary"); scratch accumulators persist across it.
# ---------------------------------------------------------------------------
def _flash_attn_kernel(q_ref, k_ref, v_ref, o_ref, m_sc, l_sc, acc_sc,
                       *, scale, tq, tk):
    qi = pl.program_id(1)
    ki = pl.program_id(2)

    @pl.when(ki == 0)
    def _init():
        m_sc[...] = jnp.full(m_sc.shape, -jnp.inf, dtype=m_sc.dtype)
        l_sc[...] = jnp.zeros(l_sc.shape, dtype=l_sc.dtype)
        acc_sc[...] = jnp.zeros(acc_sc.shape, dtype=acc_sc.dtype)

    # Causal skip: this kv tile contributes only if its first key index is
    # <= the last query index of this q tile.
    @pl.when(ki * tk <= (qi + 1) * tq - 1)
    def _compute():
        q = q_ref[0]                               # (H, TQ, hd) bf16
        k = k_ref[0]                               # (H, TK, hd) bf16
        v = v_ref[0]                               # (H, TK, hd) bf16

        # scores: batched over heads, contracts hd in place (no k transpose)
        s = jnp.einsum('hqd,hkd->hqk', q, k,
                       preferred_element_type=jnp.float32) * scale

        # causal mask as an additive bias, computed once, broadcast over H
        q_idx = qi * tq + lax.broadcasted_iota(jnp.int32, (tq, tk), 0)
        k_idx = ki * tk + lax.broadcasted_iota(jnp.int32, (tq, tk), 1)
        neg = jnp.where(k_idx <= q_idx, 0.0, -1e30).astype(jnp.float32)
        s = s + neg[None, :, :]                    # (H, TQ, TK)

        # online softmax update
        m_prev = m_sc[...]                         # (H, TQ, 1)
        m_new = jnp.maximum(m_prev, s.max(axis=-1, keepdims=True))
        alpha = jnp.exp(m_prev - m_new)
        p = jnp.exp(s - m_new)
        l_sc[...] = alpha * l_sc[...] + p.sum(axis=-1, keepdims=True)
        acc_sc[...] = alpha * acc_sc[...] + jnp.einsum(
            'hqk,hkd->hqd', p.astype(v.dtype), v,
            preferred_element_type=jnp.float32)
        m_sc[...] = m_new

    @pl.when(ki == pl.num_programs(2) - 1)
    def _finalize():
        inv_l = pl.reciprocal(l_sc[...], approx=True)   # EUP slot, nearly free
        o_ref[0] = (acc_sc[...] * inv_l).astype(o_ref.dtype)


def _flash_attention(q, k, v, *, scale):
    """q, k, v: (B, H, T, hd) bf16 -> (B, H, T, hd) f32 (causal attention)."""
    B, H, T, hd = q.shape
    tq = 128 if (T % 128 == 0) else T
    tk = 128 if (T % 128 == 0) else T
    grid = (B, T // tq, T // tk)
    kernel = functools.partial(_flash_attn_kernel, scale=scale, tq=tq, tk=tk)
    return pl.pallas_call(
        kernel,
        out_shape=jax.ShapeDtypeStruct((B, H, T, hd), jnp.float32),
        grid_spec=pltpu.PrefetchScalarGridSpec(
            num_scalar_prefetch=0,
            grid=grid,
            in_specs=[
                pl.BlockSpec((1, H, tq, hd), lambda b, qi, ki: (b, 0, qi, 0)),
                pl.BlockSpec((1, H, tk, hd), lambda b, qi, ki: (b, 0, ki, 0)),
                pl.BlockSpec((1, H, tk, hd), lambda b, qi, ki: (b, 0, ki, 0)),
            ],
            out_specs=pl.BlockSpec((1, H, tq, hd),
                                   lambda b, qi, ki: (b, 0, qi, 0)),
            scratch_shapes=[
                pltpu.VMEM((H, tq, 1), jnp.float32),    # running max m
                pltpu.VMEM((H, tq, 1), jnp.float32),    # running denom l
                pltpu.VMEM((H, tq, hd), jnp.float32),   # output accumulator
            ],
        ),
        compiler_params=pltpu.CompilerParams(
            dimension_semantics=("parallel", "parallel", "arbitrary")),
    )(q, k, v)


# ---------------------------------------------------------------------------
# Full SelfAttention forward.
# ---------------------------------------------------------------------------
def _self_attention_impl(x, w_attn, b_attn, w_proj, b_proj, n_head):
    """x: (B, T, C) f32. Weights in PyTorch nn.Linear layout (out, in)."""
    B, T, C = x.shape
    hd = C // n_head
    scale = 1.0 / math.sqrt(hd)

    # Pre-transpose + cast weights once: kernels compute x @ W in bf16.
    wqkv = jnp.transpose(w_attn).astype(jnp.bfloat16)    # (C, 3C)
    wproj = jnp.transpose(w_proj).astype(jnp.bfloat16)   # (C, C)
    bqkv = b_attn.reshape(1, 3 * C).astype(jnp.float32)
    bproj = b_proj.reshape(1, C).astype(jnp.float32)

    # 1) qkv projection with M = B*T rows (fills the MXU for small T)
    qkv = _linear_pallas(x.reshape(B * T, C), wqkv, bqkv)     # (B*T, 3C) f32

    # 2) split q/k/v and heads -> (B, H, T, hd) bf16 (halves attention DMA)
    qkv = qkv.reshape(B, T, 3, n_head, hd).transpose(2, 0, 3, 1, 4)
    q = qkv[0].astype(jnp.bfloat16)
    k = qkv[1].astype(jnp.bfloat16)
    v = qkv[2].astype(jnp.bfloat16)

    # 3) flash-style causal attention (dropout=0.0 -> attn_dropout identity)
    y = _flash_attention(q, k, v, scale=scale)                # (B, H, T, hd)

    # 4) merge heads + output projection (resid_dropout identity)
    y = y.transpose(0, 2, 1, 3).reshape(B * T, C)
    out = _linear_pallas(y, wproj, bproj)                     # (B*T, C)
    return out.reshape(B, T, C).astype(x.dtype)


self_attention_pallas = jax.jit(_self_attention_impl, static_argnums=5)


def self_attention_ref(x, w_attn, b_attn, w_proj, b_proj, n_head):
    """Pure-JAX reference matching the PyTorch forward (dropout=0)."""
    B, T, C = x.shape
    hd = C // n_head
    qkv = jnp.einsum('btc,oc->bto', x, w_attn) + b_attn
    q, k, v = jnp.split(qkv, 3, axis=-1)
    q = q.reshape(B, T, n_head, hd).transpose(0, 2, 1, 3)
    k = k.reshape(B, T, n_head, hd).transpose(0, 2, 1, 3)
    v = v.reshape(B, T, n_head, hd).transpose(0, 2, 1, 3)
    attn = jnp.einsum('bhqd,bhkd->bhqk', q, k) / math.sqrt(hd)
    mask = jnp.tril(jnp.ones((T, T), dtype=bool))
    attn = jnp.where(mask[None, None], attn, -jnp.inf)
    attn = jax.nn.softmax(attn, axis=-1)
    y = jnp.einsum('bhqk,bhkd->bhqd', attn, v)
    y = y.transpose(0, 2, 1, 3).reshape(B, T, C)
    y = jnp.einsum('btc,oc->bto', y, w_proj) + b_proj
    return y


if __name__ == "__main__":
    # config: n_embed=32, n_head=4, block_size=8 (== T), bias=True, dropout=0.0
    B, T, C, n_head = 2, 8, 32, 4

    key = jax.random.PRNGKey(0)
    kx, kw1, kb1, kw2, kb2 = jax.random.split(key, 5)

    x = jax.random.normal(kx, (B, T, C), dtype=jnp.float32)
    w_attn = jax.random.normal(kw1, (3 * C, C), dtype=jnp.float32) * 0.02
    b_attn = jax.random.normal(kb1, (3 * C,), dtype=jnp.float32) * 0.02
    w_proj = jax.random.normal(kw2, (C, C), dtype=jnp.float32) * 0.02
    b_proj = jax.random.normal(kb2, (C,), dtype=jnp.float32) * 0.02

    out = self_attention_pallas(x, w_attn, b_attn, w_proj, b_proj, n_head)
    out = jax.block_until_ready(out)

    ref = self_attention_ref(x, w_attn, b_attn, w_proj, b_proj, n_head)
    assert out.shape == (B, T, C)
    # bf16 MXU operands with f32 accumulation -> loosened tolerance vs f32 ref.
    max_diff = jnp.max(jnp.abs(out - ref))
    assert jnp.allclose(out, ref, atol=2e-2, rtol=2e-2), (
        f"mismatch vs reference, max abs diff = {max_diff:.3e}")

    print("KERNEL_OK")
</pallas_src>

<mosaic_0001>
module attributes {stable_mosaic.version = 11 : i64} {
  func.func @_linear_bias_kernel(%arg0: i32, %arg1: memref<16x32xf32, #tpu.memory_space<vmem>>, %arg2: memref<32x96xbf16, #tpu.memory_space<vmem>>, %arg3: memref<1x96xf32, #tpu.memory_space<vmem>>, %arg4: memref<16x96xf32, #tpu.memory_space<vmem>>) attributes {dimension_semantics = [#tpu.dimension_semantics<parallel>], iteration_bounds = array<i64: 1>, scalar_prefetch = 0 : i64, scratch_operands = 0 : i64, tpu.core_type = #tpu.core_type<tc>, window_params = [{transform_indices = @transform_0, window_bounds = array<i64: 16, 32>}, {pipeline_mode = #tpu.pipeline_mode<synchronous>, transform_indices = @transform_1, window_bounds = array<i64: 32, 96>}, {pipeline_mode = #tpu.pipeline_mode<synchronous>, transform_indices = @transform_2, window_bounds = array<i64: 1, 96>}, {transform_indices = @transform_3, window_bounds = array<i64: 16, 96>}]} {
    %c0 = arith.constant 0 : index
    %c0_0 = arith.constant 0 : index
    %0 = vector.load %arg1[%c0, %c0_0] : memref<16x32xf32, #tpu.memory_space<vmem>>, vector<16x32xf32>
    %1 = arith.truncf %0 : vector<16x32xf32> to vector<16x32xbf16>
    %c0_1 = arith.constant 0 : index
    %c0_2 = arith.constant 0 : index
    %2 = vector.load %arg2[%c0_1, %c0_2] : memref<32x96xbf16, #tpu.memory_space<vmem>>, vector<32x96xbf16>
    %cst = arith.constant dense<0.000000e+00> : vector<16x96xf32>
    %3 = tpu.matmul %1, %2, %cst {dimension_numbers = #tpu.dot_dimension_numbers<[1], [0], [0], [1], [0, 0, 1, 1], [], []>} : vector<16x32xbf16>, vector<32x96xbf16>, vector<16x96xf32> -> vector<16x96xf32>
    %c0_3 = arith.constant 0 : index
    %c0_4 = arith.constant 0 : index
    %4 = vector.load %arg3[%c0_3, %c0_4] : memref<1x96xf32, #tpu.memory_space<vmem>>, vector<1x96xf32>
    %5 = vector.broadcast %4 : vector<1x96xf32> to vector<16x96xf32>
    %6 = arith.addf %3, %5 : vector<16x96xf32>
    %c0_5 = arith.constant 0 : index
    %c0_6 = arith.constant 0 : index
    %7 = vector.load %arg4[%c0_5, %c0_6] : memref<16x96xf32, #tpu.memory_space<vmem>>, vector<16x96xf32>
    tpu.vector_store %arg4[%c0_5, %c0_6], %6 {strides = array<i32>} : memref<16x96xf32, #tpu.memory_space<vmem>>, vector<16x96xf32>,
    return
  }
  func.func @transform_0(%arg0: i32) -> (i32, i32) {
    %c0_i32 = arith.constant 0 : i32
    %c0_i32_0 = arith.constant 0 : i32
    return %arg0, %c0_i32 : i32, i32
  }
  func.func @transform_1(%arg0: i32) -> (i32, i32) {
    %c0_i32 = arith.constant 0 : i32
    %c0_i32_0 = arith.constant 0 : i32
    %c0_i32_1 = arith.constant 0 : i32
    return %c0_i32, %c0_i32_0 : i32, i32
  }
  func.func @transform_2(%arg0: i32) -> (i32, i32) {
    %c0_i32 = arith.constant 0 : i32
    %c0_i32_0 = arith.constant 0 : i32
    %c0_i32_1 = arith.constant 0 : i32
    return %c0_i32, %c0_i32_0 : i32, i32
  }
  func.func @transform_3(%arg0: i32) -> (i32, i32) {
    %c0_i32 = arith.constant 0 : i32
    %c0_i32_0 = arith.constant 0 : i32
    return %arg0, %c0_i32 : i32, i32
  }
}

module attributes {stable_mosaic.version = 11 : i64} {
  func.func @_flash_attn_kernel(%arg0: i32, %arg1: i32, %arg2: i32, %arg3: memref<1x4x8x8xbf16, #tpu.memory_space<vmem>>, %arg4: memref<1x4x8x8xbf16, #tpu.memory_space<vmem>>, %arg5: memref<1x4x8x8xbf16, #tpu.memory_space<vmem>>, %arg6: memref<1x4x8x8xf32, #tpu.memory_space<vmem>>, %arg7: memref<4x8x1xf32, #tpu.memory_space<vmem>>, %arg8: memref<4x8x1xf32, #tpu.memory_space<vmem>>, %arg9: memref<4x8x8xf32, #tpu.memory_space<vmem>>) attributes {dimension_semantics = [#tpu.dimension_semantics<parallel>, #tpu.dimension_semantics<parallel>, #tpu.dimension_semantics<arbitrary>], iteration_bounds = array<i64: 2, 1, 1>, scalar_prefetch = 0 : i64, scratch_operands = 3 : i64, tpu.core_type = #tpu.core_type<tc>, window_params = [{transform_indices = @transform_0, window_bounds = array<i64: 1, 4, 8, 8>}, {transform_indices = @transform_1, window_bounds = array<i64: 1, 4, 8, 8>}, {transform_indices = @transform_2, window_bounds = array<i64: 1, 4, 8, 8>}, {transform_indices = @transform_3, window_bounds = array<i64: 1, 4, 8, 8>}]} {
    %c0_i32 = arith.constant 0 : i32
    %0 = arith.cmpi eq, %arg2, %c0_i32 : i32
    %1 = arith.extui %0 : i1 to i32
    %c0_i32_0 = arith.constant 0 : i32
    %2 = arith.cmpi ne, %1, %c0_i32_0 : i32
    scf.if %2 {
      %cst = arith.constant 0xFF800000 : f32
      %13 = vector.broadcast %cst : f32 to vector<4x8x1xf32>
      %c0 = arith.constant 0 : index
      %c0_6 = arith.constant 0 : index
      %c0_7 = arith.constant 0 : index
      %14 = vector.load %arg7[%c0, %c0_6, %c0_7] : memref<4x8x1xf32, #tpu.memory_space<vmem>>, vector<4x8x1xf32>
      tpu.vector_store %arg7[%c0, %c0_6, %c0_7], %13 {strides = array<i32>} : memref<4x8x1xf32, #tpu.memory_space<vmem>>, vector<4x8x1xf32>,
      %cst_8 = arith.constant 0.000000e+00 : f32
      %15 = vector.broadcast %cst_8 : f32 to vector<4x8x1xf32>
      %c0_9 = arith.constant 0 : index
      %c0_10 = arith.constant 0 : index
      %c0_11 = arith.constant 0 : index
      %16 = vector.load %arg8[%c0_9, %c0_10, %c0_11] : memref<4x8x1xf32, #tpu.memory_space<vmem>>, vector<4x8x1xf32>
      tpu.vector_store %arg8[%c0_9, %c0_10, %c0_11], %15 {strides = array<i32>} : memref<4x8x1xf32, #tpu.memory_space<vmem>>, vector<4x8x1xf32>,
      %cst_12 = arith.constant 0.000000e+00 : f32
      %17 = vector.broadcast %cst_12 : f32 to vector<4x8x8xf32>
      %c0_13 = arith.constant 0 : index
      %c0_14 = arith.constant 0 : index
      %c0_15 = arith.constant 0 : index
      %18 = vector.load %arg9[%c0_13, %c0_14, %c0_15] : memref<4x8x8xf32, #tpu.memory_space<vmem>>, vector<4x8x8xf32>
      tpu.vector_store %arg9[%c0_13, %c0_14, %c0_15], %17 {strides = array<i32>} : memref<4x8x8xf32, #tpu.memory_space<vmem>>, vector<4x8x8xf32>,
    } else {
    }
    %c8_i32 = arith.constant 8 : i32
    %3 = arith.muli %arg2, %c8_i32 : i32
    %c1_i32 = arith.constant 1 : i32
    %4 = arith.addi %arg1, %c1_i32 : i32
    %c8_i32_1 = arith.constant 8 : i32
    %5 = arith.muli %4, %c8_i32_1 : i32
    %c1_i32_2 = arith.constant 1 : i32
    %6 = arith.subi %5, %c1_i32_2 : i32
    %7 = arith.cmpi sle, %3, %6 : i32
    %8 = arith.extui %7 : i1 to i32
    %c0_i32_3 = arith.constant 0 : i32
    %9 = arith.cmpi ne, %8, %c0_i32_3 : i32
    scf.if %9 {
      %c0 = arith.constant 0 : index
      %c0_6 = arith.constant 0 : index
      %c0_7 = arith.constant 0 : index
      %c0_8 = arith.constant 0 : index
      %13 = vector.load %arg3[%c0, %c0_6, %c0_7, %c0_8] : memref<1x4x8x8xbf16, #tpu.memory_space<vmem>>, vector<1x4x8x8xbf16>
      %14 = vector.shape_cast %13 : vector<1x4x8x8xbf16> to vector<4x8x8xbf16>
      %c0_9 = arith.constant 0 : index
      %c0_10 = arith.constant 0 : index
      %c0_11 = arith.constant 0 : index
      %c0_12 = arith.constant 0 : index
      %15 = vector.load %arg4[%c0_9, %c0_10, %c0_11, %c0_12] : memref<1x4x8x8xbf16, #tpu.memory_space<vmem>>, vector<1x4x8x8xbf16>
      %16 = vector.shape_cast %15 : vector<1x4x8x8xbf16> to vector<4x8x8xbf16>
      %c0_13 = arith.constant 0 : index
      %c0_14 = arith.constant 0 : index
      %c0_15 = arith.constant 0 : index
      %c0_16 = arith.constant 0 : index
      %17 = vector.load %arg5[%c0_13, %c0_14, %c0_15, %c0_16] : memref<1x4x8x8xbf16, #tpu.memory_space<vmem>>, vector<1x4x8x8xbf16>
      %18 = vector.shape_cast %17 : vector<1x4x8x8xbf16> to vector<4x8x8xbf16>
      "tpu.trace_start"() <{level = 10 : i32, message = "hqd,hkd->hqk"}> : () -> ()
      %cst = arith.constant dense<0.000000e+00> : vector<4x8x8xf32>
      %19 = tpu.matmul %14, %16, %cst {dimension_numbers = #tpu.dot_dimension_numbers<[2], [2], [1], [1], [0, 0, 0, 1, 1, 1], [0], [0]>} : vector<4x8x8xbf16>, vector<4x8x8xbf16>, vector<4x8x8xf32> -> vector<4x8x8xf32>
      "tpu.trace_stop"() : () -> ()
      %cst_17 = arith.constant 0.353553385 : f32
      %20 = vector.broadcast %cst_17 : f32 to vector<4x8x8xf32>
      %21 = arith.mulf %19, %20 : vector<4x8x8xf32>
      %c8_i32_18 = arith.constant 8 : i32
      %22 = arith.muli %arg1, %c8_i32_18 : i32
      %23 = tpu.iota {dimensions = array<i32: 0>} : vector<8x8xi32>
      %24 = vector.broadcast %22 : i32 to vector<8x8xi32>
      %25 = arith.addi %24, %23 : vector<8x8xi32>
      %c8_i32_19 = arith.constant 8 : i32
      %26 = arith.muli %arg2, %c8_i32_19 : i32
      %27 = tpu.iota {dimensions = array<i32: 1>} : vector<8x8xi32>
      %28 = vector.broadcast %26 : i32 to vector<8x8xi32>
      %29 = arith.addi %28, %27 : vector<8x8xi32>
      %30 = arith.cmpi sle, %29, %25 : vector<8x8xi32>
      %cst_20 = arith.constant 0.000000e+00 : f32
      %cst_21 = arith.constant -1.000000e+30 : f32
      %31 = vector.broadcast %cst_20 : f32 to vector<8x8xf32>
      %32 = vector.broadcast %cst_21 : f32 to vector<8x8xf32>
      %33 = arith.select %30, %31, %32 : vector<8x8xi1>, vector<8x8xf32>
      %34 = vector.shape_cast %33 : vector<8x8xf32> to vector<1x8x8xf32>
      %35 = vector.broadcast %34 : vector<1x8x8xf32> to vector<4x8x8xf32>
      %36 = arith.addf %21, %35 : vector<4x8x8xf32>
      %c0_22 = arith.constant 0 : index
      %c0_23 = arith.constant 0 : index
      %c0_24 = arith.constant 0 : index
      %37 = vector.load %arg7[%c0_22, %c0_23, %c0_24] : memref<4x8x1xf32, #tpu.memory_space<vmem>>, vector<4x8x1xf32>
      %cst_25 = arith.constant dense<0xFF800000> : vector<4x8xf32>
      %38 = vector.multi_reduction <maximumf>, %36, %cst_25 [2] : vector<4x8x8xf32> to vector<4x8xf32>
      %39 = vector.shape_cast %38 : vector<4x8xf32> to vector<4x8x1xf32>
      %40 = arith.maximumf %37, %39 : vector<4x8x1xf32>
      %41 = arith.subf %37, %40 : vector<4x8x1xf32>
      %42 = math.exp %41 : vector<4x8x1xf32>
      %43 = vector.broadcast %40 : vector<4x8x1xf32> to vector<4x8x8xf32>
      %44 = arith.subf %36, %43 : vector<4x8x8xf32>
      %45 = math.exp %44 : vector<4x8x8xf32>
      %c0_26 = arith.constant 0 : index
      %c0_27 = arith.constant 0 : index
      %c0_28 = arith.constant 0 : index
      %46 = vector.load %arg8[%c0_26, %c0_27, %c0_28] : memref<4x8x1xf32, #tpu.memory_space<vmem>>, vector<4x8x1xf32>
      %47 = arith.mulf %42, %46 : vector<4x8x1xf32>
      %cst_29 = arith.constant dense<0.000000e+00> : vector<4x8xf32>
      %48 = vector.multi_reduction <add>, %45, %cst_29 [2] : vector<4x8x8xf32> to vector<4x8xf32>
      %49 = vector.shape_cast %48 : vector<4x8xf32> to vector<4x8x1xf32>
      %50 = arith.addf %47, %49 : vector<4x8x1xf32>
      %c0_30 = arith.constant 0 : index
      %c0_31 = arith.constant 0 : index
      %c0_32 = arith.constant 0 : index
      %51 = vector.load %arg8[%c0_30, %c0_31, %c0_32] : memref<4x8x1xf32, #tpu.memory_space<vmem>>, vector<4x8x1xf32>
      tpu.vector_store %arg8[%c0_30, %c0_31, %c0_32], %50 {strides = array<i32>} : memref<4x8x1xf32, #tpu.memory_space<vmem>>, vector<4x8x1xf32>,
      %c0_33 = arith.constant 0 : index
      %c0_34 = arith.constant 0 : index
      %c0_35 = arith.constant 0 : index
      %52 = vector.load %arg9[%c0_33, %c0_34, %c0_35] : memref<4x8x8xf32, #tpu.memory_space<vmem>>, vector<4x8x8xf32>
      %53 = vector.broadcast %42 : vector<4x8x1xf32> to vector<4x8x8xf32>
      %54 = arith.mulf %53, %52 : vector<4x8x8xf32>
      %55 = arith.truncf %45 : vector<4x8x8xf32> to vector<4x8x8xbf16>
      "tpu.trace_start"() <{level = 10 : i32, message = "hqk,hkd->hqd"}> : () -> ()
      %cst_36 = arith.constant dense<0.000000e+00> : vector<4x8x8xf32>
      %56 = tpu.matmul %55, %18, %cst_36 {dimension_numbers = #tpu.dot_dimension_numbers<[2], [1], [1], [2], [0, 0, 0, 1, 1, 2], [0], [0]>} : vector<4x8x8xbf16>, vector<4x8x8xbf16>, vector<4x8x8xf32> -> vector<4x8x8xf32>
      "tpu.trace_stop"() : () -> ()
      %57 = arith.addf %54, %56 : vector<4x8x8xf32>
      %c0_37 = arith.constant 0 : index
      %c0_38 = arith.constant 0 : index
      %c0_39 = arith.constant 0 : index
      %58 = vector.load %arg9[%c0_37, %c0_38, %c0_39] : memref<4x8x8xf32, #tpu.memory_space<vmem>>, vector<4x8x8xf32>
      tpu.vector_store %arg9[%c0_37, %c0_38, %c0_39], %57 {strides = array<i32>} : memref<4x8x8xf32, #tpu.memory_space<vmem>>, vector<4x8x8xf32>,
      %c0_40 = arith.constant 0 : index
      %c0_41 = arith.constant 0 : index
      %c0_42 = arith.constant 0 : index
      %59 = vector.load %arg7[%c0_40, %c0_41, %c0_42] : memref<4x8x1xf32, #tpu.memory_space<vmem>>, vector<4x8x1xf32>
      tpu.vector_store %arg7[%c0_40, %c0_41, %c0_42], %40 {strides = array<i32>} : memref<4x8x1xf32, #tpu.memory_space<vmem>>, vector<4x8x1xf32>,
    } else {
    }
    %c0_i32_4 = arith.constant 0 : i32
    %10 = arith.cmpi eq, %arg2, %c0_i32_4 : i32
    %11 = arith.extui %10 : i1 to i32
    %c0_i32_5 = arith.constant 0 : i32
    %12 = arith.cmpi ne, %11, %c0_i32_5 : i32
    scf.if %12 {
      %c0 = arith.constant 0 : index
      %c0_6 = arith.constant 0 : index
      %c0_7 = arith.constant 0 : index
      %13 = vector.load %arg8[%c0, %c0_6, %c0_7] : memref<4x8x1xf32, #tpu.memory_space<vmem>>, vector<4x8x1xf32>
      %14 = tpu.reciprocal %13 {approx = true} : vector<4x8x1xf32> -> vector<4x8x1xf32>
      %c0_8 = arith.constant 0 : index
      %c0_9 = arith.constant 0 : index
      %c0_10 = arith.constant 0 : index
      %15 = vector.load %arg9[%c0_8, %c0_9, %c0_10] : memref<4x8x8xf32, #tpu.memory_space<vmem>>, vector<4x8x8xf32>
      %16 = vector.broadcast %14 : vector<4x8x1xf32> to vector<4x8x8xf32>
      %17 = arith.mulf %15, %16 : vector<4x8x8xf32>
      %c0_11 = arith.constant 0 : index
      %c0_12 = arith.constant 0 : index
      %c0_13 = arith.constant 0 : index
      %c0_14 = arith.constant 0 : index
      %18 = vector.load %arg6[%c0_11, %c0_12, %c0_13, %c0_14] : memref<1x4x8x8xf32, #tpu.memory_space<vmem>>, vector<1x4x8x8xf32>
      %19 = vector.shape_cast %18 : vector<1x4x8x8xf32> to vector<4x8x8xf32>
      %20 = vector.shape_cast %17 : vector<4x8x8xf32> to vector<1x4x8x8xf32>
      tpu.vector_store %arg6[%c0_11, %c0_12, %c0_13, %c0_14], %20 {strides = array<i32>} : memref<1x4x8x8xf32, #tpu.memory_space<vmem>>, vector<1x4x8x8xf32>,
    } else {
    }
    return
  }
  func.func @transform_0(%arg0: i32, %arg1: i32, %arg2: i32) -> (i32, i32, i32, i32) {
    %c0_i32 = arith.constant 0 : i32
    %c0_i32_0 = arith.constant 0 : i32
    %c0_i32_1 = arith.constant 0 : i32
    return %arg0, %c0_i32, %arg1, %c0_i32_0 : i32, i32, i32, i32
  }
  func.func @transform_1(%arg0: i32, %arg1: i32, %arg2: i32) -> (i32, i32, i32, i32) {
    %c0_i32 = arith.constant 0 : i32
    %c0_i32_0 = arith.constant 0 : i32
    %c0_i32_1 = arith.constant 0 : i32
    return %arg0, %c0_i32, %arg2, %c0_i32_0 : i32, i32, i32, i32
  }
  func.func @transform_2(%arg0: i32, %arg1: i32, %arg2: i32) -> (i32, i32, i32, i32) {
    %c0_i32 = arith.constant 0 : i32
    %c0_i32_0 = arith.constant 0 : i32
    %c0_i32_1 = arith.constant 0 : i32
    return %arg0, %c0_i32, %arg2, %c0_i32_0 : i32, i32, i32, i32
  }
  func.func @transform_3(%arg0: i32, %arg1: i32, %arg2: i32) -> (i32, i32, i32, i32) {
    %c0_i32 = arith.constant 0 : i32
    %c0_i32_0 = arith.constant 0 : i32
    %c0_i32_1 = arith.constant 0 : i32
    return %arg0, %c0_i32, %arg1, %c0_i32_0 : i32, i32, i32, i32
  }
}

module attributes {stable_mosaic.version = 11 : i64} {
  func.func @_linear_bias_kernel(%arg0: i32, %arg1: memref<16x32xf32, #tpu.memory_space<vmem>>, %arg2: memref<32x32xbf16, #tpu.memory_space<vmem>>, %arg3: memref<1x32xf32, #tpu.memory_space<vmem>>, %arg4: memref<16x32xf32, #tpu.memory_space<vmem>>) attributes {dimension_semantics = [#tpu.dimension_semantics<parallel>], iteration_bounds = array<i64: 1>, scalar_prefetch = 0 : i64, scratch_operands = 0 : i64, tpu.core_type = #tpu.core_type<tc>, window_params = [{transform_indices = @transform_0, window_bounds = array<i64: 16, 32>}, {pipeline_mode = #tpu.pipeline_mode<synchronous>, transform_indices = @transform_1, window_bounds = array<i64: 32, 32>}, {pipeline_mode = #tpu.pipeline_mode<synchronous>, transform_indices = @transform_2, window_bounds = array<i64: 1, 32>}, {transform_indices = @transform_3, window_bounds = array<i64: 16, 32>}]} {
    %c0 = arith.constant 0 : index
    %c0_0 = arith.constant 0 : index
    %0 = vector.load %arg1[%c0, %c0_0] : memref<16x32xf32, #tpu.memory_space<vmem>>, vector<16x32xf32>
    %1 = arith.truncf %0 : vector<16x32xf32> to vector<16x32xbf16>
    %c0_1 = arith.constant 0 : index
    %c0_2 = arith.constant 0 : index
    %2 = vector.load %arg2[%c0_1, %c0_2] : memref<32x32xbf16, #tpu.memory_space<vmem>>, vector<32x32xbf16>
    %cst = arith.constant dense<0.000000e+00> : vector<16x32xf32>
    %3 = tpu.matmul %1, %2, %cst {dimension_numbers = #tpu.dot_dimension_numbers<[1], [0], [0], [1], [0, 0, 1, 1], [], []>} : vector<16x32xbf16>, vector<32x32xbf16>, vector<16x32xf32> -> vector<16x32xf32>
    %c0_3 = arith.constant 0 : index
    %c0_4 = arith.constant 0 : index
    %4 = vector.load %arg3[%c0_3, %c0_4] : memref<1x32xf32, #tpu.memory_space<vmem>>, vector<1x32xf32>
    %5 = vector.broadcast %4 : vector<1x32xf32> to vector<16x32xf32>
    %6 = arith.addf %3, %5 : vector<16x32xf32>
    %c0_5 = arith.constant 0 : index
    %c0_6 = arith.constant 0 : index
    %7 = vector.load %arg4[%c0_5, %c0_6] : memref<16x32xf32, #tpu.memory_space<vmem>>, vector<16x32xf32>
    tpu.vector_store %arg4[%c0_5, %c0_6], %6 {strides = array<i32>} : memref<16x32xf32, #tpu.memory_space<vmem>>, vector<16x32xf32>,
    return
  }
  func.func @transform_0(%arg0: i32) -> (i32, i32) {
    %c0_i32 = arith.constant 0 : i32
    %c0_i32_0 = arith.constant 0 : i32
    return %arg0, %c0_i32 : i32, i32
  }
  func.func @transform_1(%arg0: i32) -> (i32, i32) {
    %c0_i32 = arith.constant 0 : i32
    %c0_i32_0 = arith.constant 0 : i32
    %c0_i32_1 = arith.constant 0 : i32
    return %c0_i32, %c0_i32_0 : i32, i32
  }
  func.func @transform_2(%arg0: i32) -> (i32, i32) {
    %c0_i32 = arith.constant 0 : i32
    %c0_i32_0 = arith.constant 0 : i32
    %c0_i32_1 = arith.constant 0 : i32
    return %c0_i32, %c0_i32_0 : i32, i32
  }
  func.func @transform_3(%arg0: i32) -> (i32, i32) {
    %c0_i32 = arith.constant 0 : i32
    %c0_i32_0 = arith.constant 0 : i32
    return %arg0, %c0_i32 : i32, i32
  }
}

</mosaic_0001>

<bundles_post_ra>
// kernel: _self_attention_impl.3
= control target key start
LH: loop header
LB: loop body
LE: loop exit
PB: predicated region body
PF: predicated region fallthrough
CT: control target
= control target key end

     0   :  { %v112_v0 = vmov 0.0   ;;  %vm113_vm0 = vmmov 0   ;;  %vm41_vm1 = vcmask 261120   ;;  %vm86_vm2 = vcmask 785408   ;;  %s155_s1 = inlined_call_operand.vmem [shape: bf16[32,96], index: 1, kind: input, shape index: {}]   ;;  %s156_s0 = inlined_call_operand.vmem [shape: f32[16,32], index: 0, kind: input, shape index: {}]   ;;  %s157_s2 = inlined_call_operand.vmem [shape: f32[1,96], index: 2, kind: input, shape index: {}]   ;;  %s158_s3 = inlined_call_operand.vmem [shape: f32[16,96], index: 3, kind: output, shape index: {}]  }
   0x1   :  { %100 = vmatprep.subr.bf16.mxu0 %v112_v0  ;;  %v110_v1 = vld [vmem:[%s155_s1] sm:$0xff]   ;;  %104 = vmatprep.mubr.msk.bf16.mxu0 %vm113_vm0, %v112_v0  ;;  %v111_v2 = vld [vmem:[%s155_s1 + $0x8] sm:$0xff]  }
   0x2   :  { %101 = vmatpush3.bf16.msra.mxu0 %v110_v1  ;;  %v15_v3 = vld [vmem:[%s156_s0] sm:$0xff]  ;;  %v16_v4 = vld [vmem:[%s156_s0 + $0x8] sm:$0xff] }
   0x3   :  { %102 = vmatprep.subr.bf16.mxu0 %v112_v0  ;;  %v17_v5 = vpack.c.bf16 %v16_v4, %v15_v3  ;;  %v93_v6 = vld [vmem:[%s157_s2] ss:$0 sm:$0xff] }
   0x6   :  { %103 = vmatpush3.bf16.msra.mxu0 %v111_v2 }
   0x9   :  { %105 = vmatmul.mubr.msk.bf16.vlgmr.msra.gmra.mrb[0].mxu0 %vm41_vm1, %v17_v5 }
  0xdc   :  { %v79_v7 = vpop.f32.mrb[0].mxu0 }
  0xdd   :  { %v80_v8 = vadd.f32 %v93_v6, %v79_v7  ;;  %v106_v9 = vpop.f32.mrb[1].mxu0 }
  0xde   :  { %v82_v10 = vpop.f32.mrb[2].mxu0 }
  0xdf   :  { %87 = vst.msk [vmem:[%s158_s3] sm:$0xff] %vm86_vm2, %v80_v8  ;;  %v83_v11 = vadd.f32 %v93_v6, %v82_v10  ;;  %v107_v12 = vpop.f32.mrb[3].mxu0 }
  0xe1   :  { %88 = vst.msk [vmem:[%s158_s3 + $0x8] sm:$0xff] %vm86_vm2, %v83_v11 }

// kernel: _self_attention_impl.5
= control target key start
LH: loop header
LB: loop body
LE: loop exit
PB: predicated region body
PF: predicated region fallthrough
CT: control target
= control target key end

     0   :  { %v151_v1 = vmov 0.0   ;;  %vm152_vm0 = vmmov 0   ;;  %s203_s0 = inlined_call_operand.vmem [shape: f32[16,32], index: 0, kind: input, shape index: {}]   ;;  %s204_s1 = inlined_call_operand.vmem [shape: bf16[32,32], index: 1, kind: input, shape index: {}]   ;;  %s205_s2 = inlined_call_operand.vmem [shape: f32[1,32], index: 2, kind: input, shape index: {}]   ;;  %s206_s3 = inlined_call_operand.hbm [shape: f32[16,32], index: 3, kind: output, shape index: {}]  }
   0x1   :  { %v125_v0 = vld [vmem:[%s204_s1] sm:$0xff]   ;;  %112 = vmatprep.subr.bf16.mxu0 %v151_v1  ;;  %v126_v2 = vld [vmem:[%s204_s1 + $0x8] sm:$0xff]   ;;  %116 = vmatprep.mubr.msk.bf16.mxu0 %vm152_vm0, %v151_v1 }
   0x2   :  { %113 = vmatpush3.bf16.msra.mxu0 %v125_v0  ;;  %v16_v3 = vld [vmem:[%s203_s0] sm:$0xff]  ;;  %v17_v4 = vld [vmem:[%s203_s0 + $0x8] sm:$0xff] }
   0x3   :  { %114 = vmatprep.subr.bf16.mxu0 %v151_v1 }
   0x4   :  { %8 = vsyncpa [#allocation3], 0  ;;  %v18_v5 = vpack.c.bf16 %v17_v4, %v16_v3  ;;  %vm42_vm1 = vcmask 261120   ;;  %v105_v6 = vld [vmem:[%s205_s2] ss:$0 sm:$0xff]  ;;  %s153_s1 = smov [#allocation2]  }
   0x5   :  { %s94_s22 = sshll.u32 %s153_s1, 4  ;;  %s95_s22 = int_to_ptr.vmem [resolvable:$true] %s94_s22 }
   0x6   :  { %115 = vmatpush3.bf16.msra.mxu0 %v126_v2  ;;  %s127_s0 = scalar_lea.vmem %s95_s22, 256  ;;  %p132_p1 = scmp.lt.s32.totalorder %s95_s22, %s95_s22 }
   0x7   :  { %p128_p0 = scmp.ne.s32.totalorder %s95_s22, %s127_s0  ;;  %p133_p2 = scmp.lt.s32.totalorder %s127_s0, %s127_s0 }
   0x9   :  { %117 = vmatmul.mubr.msk.bf16.vlgmr.msra.gmra.mrb[0].mxu0 %vm42_vm1, %v18_v5  ;;  %p134_p3 = por %p133_p2, %p132_p1 }
   0xb   :  { %p135_p4 = pnand %p134_p3, %p128_p0 }
  0xdc   :  { %v80_v7 = vpop.f32.mrb[0].mxu0 }
  0xdd   :  { %v81_v8 = vadd.f32 %v105_v6, %v80_v7  ;;  %v118_v9 = vpop.f32.mrb[1].mxu0 }
  0xde   :  { %v83_v10 = vpop.f32.mrb[2].mxu0 }
  0xdf   :  { %87 = vst.msk [vmem:[#allocation2] sm:$0xff] %vm42_vm1, %v81_v8  ;;  %v84_v11 = vadd.f32 %v105_v6, %v83_v10  ;;  %v119_v12 = vpop.f32.mrb[3].mxu0 }
  0xe1   :  { %88 = vst.msk [vmem:[#allocation2 + $0x8] sm:$0xff] %vm42_vm1, %v84_v11 }
  0xe2   :  { %138 = shalt.err (!%p135_p4)
}
  0xe3   :  { %s139_s24 = scalar_lea.hbm %s206_s3, 256 }
  0xe4   :  { %p140_p5 = scmp.ne.s32.totalorder %s206_s3, %s139_s24  ;;  %p143_p6 = scmp.lt.u32.totalorder %s139_s24, %s206_s3 }
  0xe6   :  { %p145_p7 = pnand %p143_p6, %p140_p5 }
  0xe8   :  { %148 = shalt.err (!%p145_p7)
}
  0xe9   :  { %s154_s29 = smov 128   ;;  %s155_s30 = smov 8  }
  0xea   :  { %100 = dma.vmem_to_hbm [thread:$0]  %s95_s22, 256, %s206_s3, [#allocation3], %s154_s29, %s154_s29, %s155_s30  }
  0xeb   :  { %149 = dma.done.wait [#allocation3], 256  }
  0xec   :  { %150 = vsyncadd [#allocation3], 4294967040 }
  0xed   :  { %104 = vsyncpa [#allocation3], 1 }

// kernel: _self_attention_impl.4
= control target key start
LH: loop header
LB: loop body
LE: loop exit
PB: predicated region body
PF: predicated region fallthrough
CT: control target
= control target key end

     0   :  { %s1197_s12 = smov 0   ;;  %s1199_s13 = smov 0   ;;  %s1378_s0 = inlined_call_operand.vmem [shape: bf16[2,4,8,8], index: 0, kind: input, shape index: {}]   ;;  %s1379_s1 = inlined_call_operand.vmem [shape: bf16[2,4,8,8], index: 1, kind: input, shape index: {}]   ;;  %s1380_s2 = inlined_call_operand.vmem [shape: bf16[2,4,8,8], index: 2, kind: input, shape index: {}]   ;;  %s1381_s3 = inlined_call_operand.vmem [shape: f32[2,4,8,8], index: 3, kind: output, shape index: {}]  }
   0x1   :  { %s1201_s14 = smov 0  }
   0x2 LB: > { %s32_s15 = sadd.s32 1, %s1166_s13  ;;  %p1006_p0 = scmp.ge.s32.totalorder %s1170_s14, 1  ;;  %s1170_s14 = sphi %s1201_s14, %s13_s14   ;;  %s1166_s13 = sphi %s1199_s13, %s1383_s13   ;;  %s1162_s12 = sphi %s1197_s12, %s1382_s12  }
   0x3   : > { %p34_p1 = scmp.ge.s32.totalorder %s32_s15, 2  ;;  %p193_p2 = scmp.lt.s32.totalorder %s1170_s14, 3 }
   0x5   : > { %s1385_s15 = smov (%p34_p1, %s32_s15), 0  ;;  %p194_p3 = pnand %p1006_p0, %p193_p2 }
   0x6   : > { %p239_p4 = scmp.lt.s32.totalorder (!%p194_p3), %s1162_s12, 1  ;;  %vm285_vm0 = vcmask (!%p194_p3), 64512   ;;  %v1172_v0 = vmov (!%p194_p3), 0.0   ;;  %vm1173_vm1 = vmmov (!%p194_p3), 0   ;;  %vm276_vm2 = vcmask (!%p194_p3), 7168  }
   0x7   : > { %197 = sbr.rel (%p194_p3) target bundleno = 837 (0x345), region = 32  ;;  %1045 = vmatprep.subr.bf16.mxu0 (!%p194_p3), %v1172_v0  ;;  %286 = vst.msk [vmem:[#allocation4] sm:$0xff] (!%p194_p3), %vm285_vm0, %v1172_v0  ;;  %287 = vst.msk [vmem:[#allocation4 + $0x8] sm:$0xff] (!%p194_p3), %vm285_vm0, %v1172_v0  ;;  %1051 = vmatprep.subr.bf16.mxu1 (!%p194_p3), %v1172_v0  ;;  %v1174_v13 = vmov (!%p194_p3), -inf   ;;  %v500_v14 = vlaneseq (!%p194_p3)  ;;  %v1175_v19 = vmov (!%p194_p3), -1e+30  }
   0x8   : > { %288 = vst.msk [vmem:[#allocation4 + $0x10] sm:$0xff] (!%p194_p3), %vm285_vm0, %v1172_v0  ;;  %289 = vst.msk [vmem:[#allocation4 + $0x18] sm:$0xff] (!%p194_p3), %vm285_vm0, %v1172_v0  ;;  %1047 = vmatprep.mubr.msk.bf16.mxu0 (!%p194_p3), %vm1173_vm1, %v1172_v0  ;;  %1053 = vmatprep.mubr.msk.bf16.mxu1 (!%p194_p3), %vm1173_vm1, %v1172_v0  ;;  %v1176_v47 = vmov (!%p194_p3), 0   ;;  %vm642_vm4 = vcmask (!%p194_p3), 1043456  }
   0x9   : > { %277 = vst.msk [vmem:[#allocation2] sm:$0xff] (!%p194_p3), %vm276_vm2, %v1174_v13  ;;  %278 = vst.msk [vmem:[#allocation2 + $0x8] sm:$0xff] (!%p194_p3), %vm276_vm2, %v1174_v13  ;;  %v501_v15 = vshrl.u32 (!%p194_p3), %v500_v14, 7  ;;  %v505_v16 = vand.u32 (!%p194_p3), 127, %v500_v14  ;;  %1122 = vset.pattern.permute.xlu0 (!%p194_p3), %v1176_v47  ;;  %1123 = vset.pattern.permute.xlu1 (!%p194_p3), %v1176_v47 }
   0xa   : > { %279 = vst.msk [vmem:[#allocation2 + $0x10] sm:$0xff] (!%p194_p3), %vm276_vm2, %v1174_v13  ;;  %280 = vst.msk [vmem:[#allocation2 + $0x18] sm:$0xff] (!%p194_p3), %vm276_vm2, %v1174_v13 }
   0xb   : > { %281 = vst.msk [vmem:[#allocation3] sm:$0xff] (!%p194_p3), %vm276_vm2, %v1172_v0  ;;  %282 = vst.msk [vmem:[#allocation3 + $0x8] sm:$0xff] (!%p194_p3), %vm276_vm2, %v1172_v0  ;;  %vm508_vm3 = vcmp.le.s32.totalorder (!%p194_p3), %v505_v16, %v501_v15 }
   0xc   : > { %283 = vst.msk [vmem:[#allocation3 + $0x10] sm:$0xff] (!%p194_p3), %vm276_vm2, %v1172_v0  ;;  %284 = vst.msk [vmem:[#allocation3 + $0x18] sm:$0xff] (!%p194_p3), %vm276_vm2, %v1172_v0  ;;  %v509_v20 = vsel (!%p194_p3), %vm508_vm3, 0.0, %v1175_v19 }
   0xe   : > { %s1387_s12 = smov (!%p239_p4, %s1162_s12), 1 }
   0xf   : > { %s1232_s16 = sshll.u32 %s1387_s12, 4  ;;  %s1028_s26 = sshll.u32 %s1387_s12, 5 }
  0x10   : > { %s254_s19 = scalar_lea.vmem %s1379_s1, %s1232_s16  ;;  %s246_s22 = scalar_lea.vmem %s1378_s0, %s1232_s16  ;;  %v1284_v48 = vld [vmem:[#allocation2] sm:$0xff]  ;;  %v1289_v51 = vld [vmem:[#allocation2 + $0x8] sm:$0xff] }
  0x11   : > { %v302_v1 = vld [vmem:[%s254_s19] sm:$0xf]  ;;  %v303_v2 = vld [vmem:[%s254_s19 + $0x4] sm:$0xf]  ;;  %v304_v5 = vld [vmem:[%s254_s19 + $0x8] sm:$0xf]  ;;  %s262_s25 = scalar_lea.vmem %s1380_s2, %s1232_s16  ;;  %s270_s29 = scalar_lea.vmem %s1381_s3, %s1028_s26 }
  0x12   : > { %v315_v3 = vsel %vm285_vm0, %v302_v1, 0  ;;  %v361_v4 = vsel %vm285_vm0, %v303_v2, 0  ;;  %v305_v6 = vld [vmem:[%s254_s19 + $0xc] sm:$0xf]  ;;  %v298_v7 = vld [vmem:[%s246_s22] sm:$0xf] }
  0x13   : > { %1046 = vmatpush3.bf16.xpose.msra.mxu0 %v315_v3  ;;  %1052 = vmatpush3.bf16.xpose.msra.mxu1 %v361_v4  ;;  %v299_v8 = vld [vmem:[%s246_s22 + $0x4] sm:$0xf]  ;;  %v407_v9 = vsel %vm285_vm0, %v304_v5, 0  ;;  %v453_v10 = vsel %vm285_vm0, %v305_v6, 0  ;;  %v300_v11 = vld [vmem:[%s246_s22 + $0x8] sm:$0xf] }
  0x14   : > { %1057 = vmatprep.subr.bf16.mxu0 %v1172_v0  ;;  %1063 = vmatprep.subr.bf16.mxu1 %v1172_v0  ;;  %v301_v12 = vld [vmem:[%s246_s22 + $0xc] sm:$0xf]  ;;  %v1299_v55 = vld [vmem:[#allocation2 + $0x10] sm:$0xff]  ;;  %v1309_v59 = vld [vmem:[#allocation2 + $0x18] sm:$0xff] }
  0x15   : > { %v306_v1 = vld [vmem:[%s262_s25] sm:$0xf]  ;;  %v307_v3 = vld [vmem:[%s262_s25 + $0x4] sm:$0xf]  ;;  %v308_v5 = vld [vmem:[%s262_s25 + $0x8] sm:$0xf] }
  0x16   : > { %v644_v2 = vsel %vm642_vm4, %v306_v1, 0  ;;  %v690_v4 = vsel %vm642_vm4, %v307_v3, 0  ;;  %v736_v6 = vsel %vm642_vm4, %v308_v5, 0  ;;  %v580_v47 = vld [vmem:[#allocation3 + $0x10] sm:$0xff]  ;;  %v607_v1 = vld [vmem:[#allocation4] sm:$0xff] }
  0x1a   : > { %1048 = vmatmul.mubr.msk.bf16.vlgmr.msra.gmra.mrb[0].mxu0 %vm285_vm0, %v298_v7  ;;  %1054 = vmatmul.mubr.msk.bf16.vlgmr.msra.gmra.mrb[0].mxu1 %vm285_vm0, %v299_v8  ;;  %v309_v7 = vld [vmem:[%s262_s25 + $0xc] sm:$0xf] }
  0x1b   : > { %1058 = vmatpush3.bf16.xpose.msra.mxu0 %v407_v9  ;;  %1064 = vmatpush3.bf16.xpose.msra.mxu1 %v453_v10  ;;  %v782_v8 = vsel %vm642_vm4, %v309_v7, 0 }
  0x1c   : > { %1059 = vmatprep.mubr.msk.bf16.mxu0 %vm1173_vm1, %v1172_v0  ;;  %1065 = vmatprep.mubr.msk.bf16.mxu1 %vm1173_vm1, %v1172_v0 }
  0x1d   : > { %1069 = vmatprep.subr.bf16.mxu0 %v1172_v0  ;;  %1075 = vmatprep.subr.bf16.mxu1 %v1172_v0 }
  0x22   : > { %1060 = vmatmul.mubr.msk.bf16.vlgmr.msra.gmra.mrb[4].mxu0 %vm285_vm0, %v300_v11  ;;  %1066 = vmatmul.mubr.msk.bf16.vlgmr.msra.gmra.mrb[4].mxu1 %vm285_vm0, %v301_v12 }
  0x23   : > { %1071 = vmatprep.mubr.msk.bf16.mxu0 %vm1173_vm1, %v1172_v0  ;;  %1077 = vmatprep.mubr.msk.bf16.mxu1 %vm1173_vm1, %v1172_v0 }
  0x24   : > { %1070 = vmatpush3.bf16.msra.mxu0 %v644_v2  ;;  %1076 = vmatpush3.bf16.msra.mxu1 %v690_v4  ;;  %v608_v4 = vld [vmem:[#allocation4 + $0x8] sm:$0xff] }
  0x25   : > { %1081 = vmatprep.subr.bf16.mxu0 %v1172_v0  ;;  %1087 = vmatprep.subr.bf16.mxu1 %v1172_v0 }
  0xed   : > { %v351_v17 = vpop.f32.mrb[0].mxu0  ;;  %v397_v18 = vpop.f32.mrb[0].mxu1 }
  0xee   : > { %v495_v21 = vmul.f32 0.35355338, %v351_v17  ;;  %v1049_v22 = vpop.f32.mrb[1].mxu0  ;;  %v496_v23 = vmul.f32 0.35355338, %v397_v18  ;;  %v1055_v24 = vpop.f32.mrb[1].mxu1 }
  0xef   : > { %v354_v25 = vpop.f32.mrb[2].mxu0  ;;  %v400_v26 = vpop.f32.mrb[2].mxu1 }
  0xf0   : > { %v1050_v27 = vpop.f32.mrb[3].mxu0  ;;  %v1056_v28 = vpop.f32.mrb[3].mxu1  ;;  %v1274_v29 = vadd.f32 %v509_v20, %v495_v21  ;;  %v1276_v30 = vadd.f32 %v509_v20, %v496_v23 }
  0xf2   : > { %v518_v31 = vsel %vm285_vm0, %v1274_v29, -inf  ;;  %v521_v32 = vsel %vm285_vm0, %v1276_v30, -inf }
  0xf3   : > { %519 = vmax.xlane.f32.xlu0 %v518_v31 }
  0xf5   : > { %v443_v33 = vpop.f32.mrb[4].mxu0  ;;  %v489_v34 = vpop.f32.mrb[4].mxu1 }
  0xf6   : > { %v497_v35 = vmul.f32 0.35355338, %v443_v33  ;;  %v1061_v36 = vpop.f32.mrb[5].mxu0  ;;  %v498_v37 = vmul.f32 0.35355338, %v489_v34  ;;  %v1067_v38 = vpop.f32.mrb[5].mxu1 }
  0xf7   : > { %522 = vmax.xlane.f32.xlu0 %v521_v32  ;;  %v446_v39 = vpop.f32.mrb[6].mxu0  ;;  %v492_v40 = vpop.f32.mrb[6].mxu1 }
  0xf8   : > { %v1062_v41 = vpop.f32.mrb[7].mxu0  ;;  %v1068_v42 = vpop.f32.mrb[7].mxu1  ;;  %v512_v43 = vadd.f32 %v509_v20, %v497_v35  ;;  %v513_v44 = vadd.f32 %v509_v20, %v498_v37  ;;  %v578_v40 = vld [vmem:[#allocation3] sm:$0xff] }
  0xfa   : > { %v524_v45 = vsel %vm285_vm0, %v512_v43, -inf  ;;  %v527_v46 = vsel %vm285_vm0, %v513_v44, -inf }
  0xfb   : > { %525 = vmax.xlane.f32.xlu1 %v524_v45 }
  0xff   : > { %528 = vmax.xlane.f32.xlu1 %v527_v46 }
 0x180   : > { %v520_v49 = vpop.xlane.xlu0 %519 }
 0x181   : > { %v1287_v50 = vmax.f32 %v1284_v48, %v520_v49 }
 0x183   : > { %v534_v52 = vsub.f32 %v1284_v48, %v1287_v50  ;;  %832 = vst.msk [vmem:[#allocation2] sm:$0xff] %vm276_vm2, %v1287_v50  ;;  %548 = vperm.xlu0 %1122, %v1287_v50  }
 0x184   : > { %v523_v53 = vpop.xlane.xlu0 %522 }
 0x185   : > { %v1297_v54 = vmax.f32 %v1289_v51, %v523_v53 }
 0x187   : > { %v535_v56 = vsub.f32 %v1289_v51, %v1297_v54  ;;  %833 = vst.msk [vmem:[#allocation2 + $0x8] sm:$0xff] %vm276_vm2, %v1297_v54  ;;  %553 = vperm.xlu1 %1123, %v1297_v54   ;;  %v581_v51 = vld [vmem:[#allocation3 + $0x18] sm:$0xff] }
 0x188   : > { %v526_v57 = vpop.xlane.xlu1 %525 }
 0x189   : > { %v1307_v58 = vmax.f32 %v1299_v55, %v526_v57  ;;  %v540_v31 = vmul.f32 1.442695, %v535_v56 }
 0x18b   : > { %v536_v60 = vsub.f32 %v1299_v55, %v1307_v58  ;;  %834 = vst.msk [vmem:[#allocation2 + $0x10] sm:$0xff] %vm276_vm2, %v1307_v58  ;;  %558 = vperm.xlu1 %1123, %v1307_v58  }
 0x18c   : > { %v529_v61 = vpop.xlane.xlu1 %528 }
 0x18d   : > { %v1317_v62 = vmax.f32 %v1309_v59, %v529_v61  ;;  %v542_v34 = vmul.f32 1.442695, %v536_v60 }
 0x18f   : > { %v537_v63 = vsub.f32 %v1309_v59, %v1317_v62  ;;  %835 = vst.msk [vmem:[#allocation2 + $0x18] sm:$0xff] %vm276_vm2, %v1317_v62  ;;  %563 = vperm.xlu1 %1123, %v1317_v62  }
 0x191   : > { %v544_v35 = vmul.f32 1.442695, %v537_v63 }
 0x202   : > { %v549_v9 = vpop.permute.xlu0 %548 }
 0x203   : > { %v566_v10 = vsub.f32 %v1274_v29, %v549_v9 }
 0x205   : > { %v570_v11 = vmul.f32 1.442695, %v566_v10 }
 0x206   : > { %v554_v12 = vpop.permute.xlu1 %553 }
 0x207   : > { %1124 = vpow2.f32 %v570_v11  ;;  %v567_v13 = vsub.f32 %v1276_v30, %v554_v12 }
 0x209   : > { %v572_v14 = vmul.f32 1.442695, %v567_v13  ;;  %v609_v13 = vld [vmem:[#allocation4 + $0x10] sm:$0xff] }
 0x20a   : > { %v559_v15 = vpop.permute.xlu1 %558 }
 0x20b   : > { %1126 = vpow2.f32 %v572_v14  ;;  %v568_v16 = vsub.f32 %v512_v43, %v559_v15  ;;  %v579_v43 = vld [vmem:[#allocation3 + $0x8] sm:$0xff] }
 0x20d   : > { %v574_v17 = vmul.f32 1.442695, %v568_v16 }
 0x20e   : > { %v564_v18 = vpop.permute.xlu1 %563 }
 0x20f   : > { %1128 = vpow2.f32 %v574_v17  ;;  %v569_v19 = vsub.f32 %v513_v44, %v564_v18 }
 0x211   : > { %v1125_v20 = vpop.eup %1124  ;;  %v576_v21 = vmul.f32 1.442695, %v569_v19 }
 0x212   : > { %v586_v22 = vsel %vm285_vm0, %v1125_v20, 0.0  ;;  %v635_v23 = vpack.c.bf16 %v1125_v20, %v1125_v20  ;;  %v610_v20 = vld [vmem:[#allocation4 + $0x18] sm:$0xff] }
 0x213   : > { %1130 = vpow2.f32 %v576_v21  ;;  %587 = vadd.xlane.f32.xlu1 %v586_v22 }
 0x214   : > { %1072 = vmatmul.mubr.msk.bf16.vlgmr.msra.gmra.mrb[8].mxu0 %vm285_vm0, %v635_v23  ;;  %1132 = vpow2.f32 %v540_v31 }
 0x215   : > { %v1127_v24 = vpop.eup %1126  ;;  %1082 = vmatpush3.bf16.msra.mxu0 %v736_v6  ;;  %1083 = vmatprep.mubr.msk.bf16.mxu0 %vm1173_vm1, %v1172_v0 }
 0x216   : > { %v589_v25 = vsel %vm285_vm0, %v1127_v24, 0.0  ;;  %v636_v26 = vpack.c.bf16 %v1127_v24, %v1127_v24 }
 0x217   : > { %590 = vadd.xlane.f32.xlu0 %v589_v25 }
 0x218   : > { %1078 = vmatmul.mubr.msk.bf16.vlgmr.msra.gmra.mrb[8].mxu1 %vm285_vm0, %v636_v26 }
 0x219   : > { %v1129_v27 = vpop.eup %1128  ;;  %1088 = vmatpush3.bf16.msra.mxu1 %v782_v8  ;;  %1089 = vmatprep.mubr.msk.bf16.mxu1 %vm1173_vm1, %v1172_v0  ;;  %v538_v0 = vmul.f32 1.442695, %v534_v52 }
 0x21a   : > { %v592_v28 = vsel %vm285_vm0, %v1129_v27, 0.0  ;;  %v637_v29 = vpack.c.bf16 %v1129_v27, %v1129_v27 }
 0x21b   : > { %593 = vadd.xlane.f32.xlu1 %v592_v28  ;;  %1134 = vpow2.f32 %v538_v0 }
 0x21c   : > { %1084 = vmatmul.mubr.msk.bf16.vlgmr.msra.gmra.mrb[12].mxu0 %vm285_vm0, %v637_v29  ;;  %1136 = vpow2.f32 %v542_v34 }
 0x21d   : > { %v1131_v30 = vpop.eup %1130  ;;  %1138 = vpow2.f32 %v544_v35 }
 0x21e   : > { %v595_v32 = vsel %vm285_vm0, %v1131_v30, 0.0  ;;  %v638_v33 = vpack.c.bf16 %v1131_v30, %v1131_v30  ;;  %v1133_v36 = vpop.eup %1132 }
 0x21f   : > { %596 = vadd.xlane.f32.xlu1 %v595_v32  ;;  %v583_v45 = vmul.f32 %v1133_v36, %v579_v43 }
 0x220   : > { %1090 = vmatmul.mubr.msk.bf16.vlgmr.msra.gmra.mrb[12].mxu1 %vm285_vm0, %v638_v33 }
 0x225   : > { %v1135_v37 = vpop.eup %1134 }
 0x226   : > { %v1137_v38 = vpop.eup %1136  ;;  %v582_v41 = vmul.f32 %v1135_v37, %v578_v40 }
 0x227   : > { %v1139_v39 = vpop.eup %1138  ;;  %v584_v49 = vmul.f32 %v1137_v38, %v580_v47 }
 0x228   : > { %v585_v54 = vmul.f32 %v1139_v39, %v581_v51 }
 0x22d   : > { %618 = vperm.xlu0 %1122, %v1133_v36  }
 0x230   : > { %613 = vperm.xlu1 %1123, %v1135_v37  }
 0x234   : > { %623 = vperm.xlu1 %1123, %v1137_v38  }
 0x238   : > { %628 = vperm.xlu1 %1123, %v1139_v39  }
 0x2a0   : > { %v588_v42 = vpop.xlane.xlu1 %587 }
 0x2a1   : > { %v598_v44 = vadd.f32 %v588_v42, %v582_v41 }
 0x2a3   : > { %603 = vst.msk [vmem:[#allocation3] sm:$0xff] %vm276_vm2, %v598_v44 }
 0x2a4   : > { %v591_v46 = vpop.xlane.xlu0 %590 }
 0x2a5   : > { %v599_v48 = vadd.f32 %v591_v46, %v583_v45 }
 0x2a7   : > { %604 = vst.msk [vmem:[#allocation3 + $0x8] sm:$0xff] %vm276_vm2, %v599_v48 }
 0x2a8   : > { %v594_v50 = vpop.xlane.xlu1 %593 }
 0x2a9   : > { %v600_v52 = vadd.f32 %v594_v50, %v584_v49 }
 0x2aa   : > { %v839_v53 = vld [vmem:[#allocation3] sm:$0xff] }
 0x2ab   : > { %605 = vst.msk [vmem:[#allocation3 + $0x10] sm:$0xff] %vm276_vm2, %v600_v52  ;;  %1140 = vrcp.f32 %v839_v53 }
 0x2ac   : > { %v597_v55 = vpop.xlane.xlu1 %596  ;;  %v619_v5 = vpop.permute.xlu0 %618 }
 0x2ad   : > { %v601_v56 = vadd.f32 %v597_v55, %v585_v54  ;;  %v632_v11 = vmul.f32 %v619_v5, %v608_v4 }
 0x2ae   : > { %v840_v57 = vld [vmem:[#allocation3 + $0x8] sm:$0xff] }
 0x2af   : > { %606 = vst.msk [vmem:[#allocation3 + $0x18] sm:$0xff] %vm276_vm2, %v601_v56  ;;  %1142 = vrcp.f32 %v840_v57 }
 0x2b0   : > { %v614_v2 = vpop.permute.xlu1 %613 }
 0x2b1   : > { %v631_v3 = vmul.f32 %v614_v2, %v607_v1 }
 0x2b2   : > { %v841_v58 = vld [vmem:[#allocation3 + $0x10] sm:$0xff] }
 0x2b3   : > { %1144 = vrcp.f32 %v841_v58 }
 0x2b4   : > { %v624_v9 = vpop.permute.xlu1 %623 }
 0x2b5   : > { %v1141_v59 = vpop.eup %1140  ;;  %v633_v18 = vmul.f32 %v624_v9, %v609_v13 }
 0x2b6   : > { %853 = vperm.xlu1 %1123, %v1141_v59   ;;  %v842_v60 = vld [vmem:[#allocation3 + $0x18] sm:$0xff] }
 0x2b7   : > { %1146 = vrcp.f32 %v842_v60 }
 0x2b8   : > { %v629_v21 = vpop.permute.xlu1 %628 }
 0x2b9   : > { %v1143_v61 = vpop.eup %1142  ;;  %v634_v26 = vmul.f32 %v629_v21, %v610_v20 }
 0x2ba   : > { %858 = vperm.xlu0 %1122, %v1143_v61  }
 0x2bd   : > { %v1145_v62 = vpop.eup %1144 }
 0x2be   : > { %863 = vperm.xlu1 %1123, %v1145_v62  }
 0x2c1   : > { %v1147_v63 = vpop.eup %1146 }
 0x2c2   : > { %868 = vperm.xlu0 %1122, %v1147_v63  }
 0x2e7   : > { %v680_v6 = vpop.f32.mrb[8].mxu0 }
 0x2e8   : > { %v824_v7 = vadd.f32 %v680_v6, %v631_v3  ;;  %v1073_v8 = vpop.f32.mrb[9].mxu0 }
 0x2e9   : > { %v683_v10 = vpop.f32.mrb[10].mxu0 }
 0x2ea   : > { %828 = vst.msk [vmem:[#allocation4] sm:$0xff] %vm285_vm0, %v824_v7  ;;  %v1074_v12 = vpop.f32.mrb[11].mxu0 }
 0x2eb   : > { %v726_v14 = vpop.f32.mrb[8].mxu1 }
 0x2ec   : > { %v825_v15 = vadd.f32 %v726_v14, %v632_v11  ;;  %v1079_v16 = vpop.f32.mrb[9].mxu1 }
 0x2ed   : > { %v729_v17 = vpop.f32.mrb[10].mxu1 }
 0x2ee   : > { %829 = vst.msk [vmem:[#allocation4 + $0x8] sm:$0xff] %vm285_vm0, %v825_v15  ;;  %v1080_v19 = vpop.f32.mrb[11].mxu1 }
 0x2ef   : > { %v772_v22 = vpop.f32.mrb[12].mxu0 }
 0x2f0   : > { %v826_v23 = vadd.f32 %v772_v22, %v633_v18  ;;  %v1085_v24 = vpop.f32.mrb[13].mxu0 }
 0x2f1   : > { %v775_v25 = vpop.f32.mrb[14].mxu0  ;;  %v847_v0 = vld [vmem:[#allocation4] sm:$0xff] }
 0x2f2   : > { %830 = vst.msk [vmem:[#allocation4 + $0x10] sm:$0xff] %vm285_vm0, %v826_v23  ;;  %v1086_v27 = vpop.f32.mrb[15].mxu0 }
 0x2f3   : > { %v818_v28 = vpop.f32.mrb[12].mxu1 }
 0x2f4   : > { %v827_v29 = vadd.f32 %v818_v28, %v634_v26  ;;  %v1091_v30 = vpop.f32.mrb[13].mxu1 }
 0x2f5   : > { %v821_v31 = vpop.f32.mrb[14].mxu1  ;;  %v848_v35 = vld [vmem:[#allocation4 + $0x8] sm:$0xff] }
 0x2f6   : > { %831 = vst.msk [vmem:[#allocation4 + $0x18] sm:$0xff] %vm285_vm0, %v827_v29  ;;  %v1092_v32 = vpop.f32.mrb[15].mxu1 }
 0x2f9   : > { %v849_v39 = vld [vmem:[#allocation4 + $0x10] sm:$0xff] }
 0x2fd   : > { %v850_v42 = vld [vmem:[#allocation4 + $0x18] sm:$0xff] }
 0x335   : > { %v854_v33 = vpop.permute.xlu1 %853 }
 0x336   : > { %v871_v34 = vmul.f32 %v854_v33, %v847_v0 }
 0x338   : > { %876 = vst.msk [vmem:[%s270_s29] sm:$0xff] %vm285_vm0, %v871_v34 }
 0x339   : > { %v859_v36 = vpop.permute.xlu0 %858 }
 0x33a   : > { %v872_v37 = vmul.f32 %v859_v36, %v848_v35 }
 0x33c   : > { %877 = vst.msk [vmem:[%s270_s29 + $0x8] sm:$0xff] %vm285_vm0, %v872_v37 }
 0x33d   : > { %v864_v38 = vpop.permute.xlu1 %863 }
 0x33e   : > { %v873_v40 = vmul.f32 %v864_v38, %v849_v39 }
 0x340   : > { %878 = vst.msk [vmem:[%s270_s29 + $0x10] sm:$0xff] %vm285_vm0, %v873_v40 }
 0x341   : > { %v869_v41 = vpop.permute.xlu0 %868 }
 0x342   : > { %v874_v43 = vmul.f32 %v869_v41, %v850_v42 }
 0x344   : > { %879 = vst.msk [vmem:[%s270_s29 + $0x18] sm:$0xff] %vm285_vm0, %v874_v43 }
 0x345 PF: > { %s13_s14 = sadd.s32 1, %s1170_s14   ;;  %s1382_s12 = smov %s1166_s13 }
 0x346   : > { %p10_p5 = scmp.ge.s32.totalorder %s13_s14, 4   ;;  %s1383_s13 = smov %s1385_s15 }
 0x348   :  { %12 = sbr.rel (!%p10_p5) target bundleno = 2 (0x2), region = 80 }

</bundles_post_ra>
